<compile_context>
chip_gen: v6e
topology: v6e:2x2x1
jax: 0.10.0
libtpu: 0.0.40
codegen_flags: <defaults>
</compile_context>

<pallas_src>
import jax
import jax.numpy as jnp
from jax.experimental import pallas as pl
from jax.experimental.pallas import tpu as pltpu  # noqa: F401  (kept for TPU-specific tuning hooks)

HID = 32  # A3TGCN2 out_channels


# ----------------------------------------------------------------------------
# Pallas kernel: whole batch in one invocation (rows = B*N).
# ----------------------------------------------------------------------------
def tgnn_kernel(x_ref, a_ref, wbig_ref, bbig_ref, p_ref, wout_ref, bout_ref,
                out_ref):
    x = x_ref[...]                                   # [B*N, T*F]   bf16
    a = a_ref[...]                                   # [B*N, B*N]   bf16 = kron(I_B, D^-1/2 (A+I) D^-1/2)

    # 1) One adjacency matmul covers every batch element and every period.
    ax = jnp.dot(a, x, preferred_element_type=jnp.float32)              # [B*N, T*F] f32

    # 2) One fused gate matmul for all periods and both gate halves.
    #    The z-half of W/b was negated wrapper-side, so sigmoid(pre_z) == (1 - Z).
    pre = jnp.dot(ax.astype(jnp.bfloat16), wbig_ref[...],
                  preferred_element_type=jnp.float32) + bbig_ref[...]   # [B*N, 2*T*H]
    half = pre.shape[-1] // 2                                           # T*H

    # sigmoid via EUP exp + approx reciprocal (keeps the chain off the VALU).
    one_minus_z = pl.reciprocal(1.0 + jnp.exp(-pre[:, :half]), approx=True)
    h_tilde = jnp.tanh(pre[:, half:])
    h_new = one_minus_z * h_tilde                                       # [B*N, T*H]  (H_prev == 0)

    # 3) Attention-weighted sum over periods as a matmul with kron(softmax(att), I_H).
    acc = jnp.dot(h_new.astype(jnp.bfloat16), p_ref[...],
                  preferred_element_type=jnp.float32)                   # [B*N, H]

    # 4) ReLU + output Linear(32 -> F).
    h = jnp.maximum(acc, 0.0)
    y = jnp.dot(h.astype(jnp.bfloat16), wout_ref[...],
                preferred_element_type=jnp.float32) + bout_ref[...]     # [B*N, F]
    # TODO(synk): F=4 << 128 lanes -> masked store; present a lane-dense output slab
    # if N/F ever scale up (negligible at this size).
    out_ref[...] = y.astype(out_ref.dtype)


# ----------------------------------------------------------------------------
# Wrapper: weight fusion + layout plumbing + pallas_call (single grid step).
# ----------------------------------------------------------------------------
def temporal_gnn_forward(x, a_hat, params):
    B, T, N, Fdim = x.shape
    H = HID

    probs = jax.nn.softmax(params["att"]).astype(jnp.float32)           # [T]

    # H_prev = 0  =>  only the conv-half of each gate Linear matters; fuse it into
    # the GCN weight by associativity, together with the biases.
    wlzx = params["wlz"][:H]                                            # [H, H]
    wlhx = params["wlh"][:H]
    wz_f = params["wz"] @ wlzx                                          # [F, H]
    wh_f = params["wh"] @ wlhx                                          # [F, H]
    bz_f = params["bz"] @ wlzx + params["blz"]                          # [H]
    bh_f = params["bh"] @ wlhx + params["blh"]                          # [H]

    # Block-diagonal stack over periods; z-half NEGATED so the kernel's sigmoid
    # directly yields (1 - Z).
    eye_t = jnp.eye(T, dtype=jnp.float32)
    w_big = jnp.concatenate(
        [jnp.kron(eye_t, -wz_f), jnp.kron(eye_t, wh_f)], axis=1)        # [T*F, 2*T*H]
    b_big = jnp.concatenate(
        [jnp.tile(-bz_f, T), jnp.tile(bh_f, T)]).reshape(1, 2 * T * H)

    # Attention-weighted time reduction as a matmul.
    p_mat = jnp.kron(probs[:, None], jnp.eye(H, dtype=jnp.float32))     # [T*H, H]

    # Fold the batch into the row dimension -> single kernel invocation.
    a_big = jnp.kron(jnp.eye(B, dtype=jnp.float32), a_hat)              # [B*N, B*N]
    x_packed = jnp.transpose(x, (0, 2, 1, 3)).reshape(B * N, T * Fdim)  # [B*N, T*F]

    bf16 = jnp.bfloat16
    operands = (
        x_packed.astype(bf16),            # MXU operand
        a_big.astype(bf16),               # MXU operand
        w_big.astype(bf16),               # MXU operand
        b_big,                            # f32 bias (added after f32 accumulation)
        p_mat.astype(bf16),               # MXU operand
        params["wout"].astype(bf16),      # MXU operand
        params["bout"].reshape(1, Fdim),  # f32 bias
    )

    def full_spec(arr):
        nd = arr.ndim
        return pl.BlockSpec(arr.shape, lambda i, _nd=nd: (0,) * _nd)

    out2d = pl.pallas_call(
        tgnn_kernel,
        out_shape=jax.ShapeDtypeStruct((B * N, Fdim), jnp.float32),
        grid=(1,),
        in_specs=[full_spec(op) for op in operands],
        out_specs=pl.BlockSpec((B * N, Fdim), lambda i: (0, 0)),
    )(*operands)

    return out2d.reshape(B, N, Fdim)


# ----------------------------------------------------------------------------
# Glue: dense GCN normalization (gcn_norm with add_self_loops=True) and params.
# ----------------------------------------------------------------------------
def build_gcn_adj(edge_index, edge_weight, num_nodes):
    # NOTE: assumes the provided edge list has no self-loops (gcn_norm adds them
    # with weight 1.0 via add_remaining_self_loops); duplicate edges are summed,
    # matching PyG scatter semantics.
    row = edge_index[0]  # source
    col = edge_index[1]  # target
    loop = jnp.arange(num_nodes, dtype=row.dtype)
    row = jnp.concatenate([row, loop])
    col = jnp.concatenate([col, loop])
    w = jnp.concatenate([edge_weight.astype(jnp.float32),
                         jnp.ones((num_nodes,), jnp.float32)])
    deg = jnp.zeros((num_nodes,), jnp.float32).at[col].add(w)
    dinv = jnp.where(deg > 0, 1.0 / jnp.sqrt(deg), 0.0)
    norm = dinv[row] * w * dinv[col]
    # out[i] = sum_{e: col_e = i} norm_e * x[row_e]  ->  A_hat[i, j]
    return jnp.zeros((num_nodes, num_nodes), jnp.float32).at[col, row].add(norm)


def init_params(key, node_feat, periods):
    ks = jax.random.split(key, 14)
    n = lambda k, shape, s: (s * jax.random.normal(k, shape)).astype(jnp.float32)
    return {
        # GCNConv weights stored as [in, out] (already transposed for x @ W)
        "wz": n(ks[0], (node_feat, HID), 0.3), "bz": n(ks[1], (HID,), 0.1),
        "wr": n(ks[2], (node_feat, HID), 0.3), "br": n(ks[3], (HID,), 0.1),
        "wh": n(ks[4], (node_feat, HID), 0.3), "bh": n(ks[5], (HID,), 0.1),
        # gate Linears stored as W^T: [2*HID, HID] (rows :HID -> conv part, HID: -> H part)
        "wlz": n(ks[6], (2 * HID, HID), 0.15), "blz": n(ks[7], (HID,), 0.1),
        "wlr": n(ks[8], (2 * HID, HID), 0.15), "blr": n(ks[9], (HID,), 0.1),
        "wlh": n(ks[10], (2 * HID, HID), 0.15), "blh": n(ks[11], (HID,), 0.1),
        # A3TGCN2 attention (softmaxed at call time) + output Linear(32 -> F)
        "att": jax.random.uniform(ks[12], (periods,), jnp.float32),
        "wout": n(ks[13], (HID, node_feat), 0.2),
        "bout": jnp.zeros((node_feat,), jnp.float32),
    }


def reference_forward(x, a_hat, params):
    # Pure-JAX f32 reference mirroring the FULL PyTorch semantics (r-gate and
    # H_prev terms included) — for validation only.
    B, T, N, Fdim = x.shape
    probs = jax.nn.softmax(params["att"])

    def conv(xt, w, b):
        return jnp.einsum("ij,bjh->bih", a_hat, xt @ w) + b

    h_acc = jnp.zeros((B, N, HID), jnp.float32)
    for t in range(T):
        xt = x[:, t]
        cz = conv(xt, params["wz"], params["bz"])
        cr = conv(xt, params["wr"], params["br"])
        ch = conv(xt, params["wh"], params["bh"])
        hp = jnp.zeros((B, N, HID), jnp.float32)
        z = jax.nn.sigmoid(jnp.concatenate([cz, hp], -1) @ params["wlz"] + params["blz"])
        r = jax.nn.sigmoid(jnp.concatenate([cr, hp], -1) @ params["wlr"] + params["blr"])
        ht = jnp.tanh(jnp.concatenate([ch, hp * r], -1) @ params["wlh"] + params["blh"])
        h_acc = h_acc + probs[t] * (z * hp + (1.0 - z) * ht)
    return jax.nn.relu(h_acc) @ params["wout"] + params["bout"]


if __name__ == "__main__":
    B, T, N, Fdim = 2, 8, 16, 4   # batch, periods (slide window), nodes, node_features
    key = jax.random.PRNGKey(0)
    k_x, k_w, k_p = jax.random.split(key, 3)

    x = jax.random.normal(k_x, (B, T, N, Fdim), jnp.float32)

    # Deterministic graph: each node i -> (i+1)%N, (i+3)%N, (i+7)%N (no self loops).
    src = jnp.tile(jnp.arange(N, dtype=jnp.int32), 3)
    dst = jnp.concatenate([(jnp.arange(N, dtype=jnp.int32) + d) % N for d in (1, 3, 7)])
    edge_index = jnp.stack([src, dst])
    edge_weight = jax.random.uniform(k_w, (src.shape[0],), jnp.float32, 0.5, 1.5)

    a_hat = build_gcn_adj(edge_index, edge_weight, N)
    params = init_params(k_p, Fdim, T)

    out = jax.block_until_ready(temporal_gnn_forward(x, a_hat, params))
    ref = reference_forward(x, a_hat, params)
    assert out.shape == (B, N, Fdim)
    # Tolerance loosened vs. the pure-f32 version: MXU operands are bf16 in the
    # kernel (f32 accumulation), as recommended by the perf review.
    assert jnp.allclose(out, ref, atol=5e-2, rtol=5e-2), float(jnp.max(jnp.abs(out - ref)))
    print("KERNEL_OK")
</pallas_src>

<mosaic_0001>
module attributes {stable_mosaic.version = 11 : i64} {
  func.func @tgnn_kernel(%arg0: i32, %arg1: memref<32x32xbf16, #tpu.memory_space<vmem>>, %arg2: memref<32x32xbf16, #tpu.memory_space<vmem>>, %arg3: memref<32x512xbf16, #tpu.memory_space<vmem>>, %arg4: memref<1x512xf32, #tpu.memory_space<vmem>>, %arg5: memref<256x32xbf16, #tpu.memory_space<vmem>>, %arg6: memref<32x4xbf16, #tpu.memory_space<vmem>>, %arg7: memref<1x4xf32, #tpu.memory_space<vmem>>, %arg8: memref<32x4xf32, #tpu.memory_space<vmem>>) attributes {dimension_semantics = [#tpu.dimension_semantics<arbitrary>], iteration_bounds = array<i64: 1>, scalar_prefetch = 0 : i64, scratch_operands = 0 : i64, tpu.core_type = #tpu.core_type<tc>, window_params = [{pipeline_mode = #tpu.pipeline_mode<synchronous>, transform_indices = @transform_0, window_bounds = array<i64: 32, 32>}, {pipeline_mode = #tpu.pipeline_mode<synchronous>, transform_indices = @transform_1, window_bounds = array<i64: 32, 32>}, {pipeline_mode = #tpu.pipeline_mode<synchronous>, transform_indices = @transform_2, window_bounds = array<i64: 32, 512>}, {pipeline_mode = #tpu.pipeline_mode<synchronous>, transform_indices = @transform_3, window_bounds = array<i64: 1, 512>}, {pipeline_mode = #tpu.pipeline_mode<synchronous>, transform_indices = @transform_4, window_bounds = array<i64: 256, 32>}, {pipeline_mode = #tpu.pipeline_mode<synchronous>, transform_indices = @transform_5, window_bounds = array<i64: 32, 4>}, {pipeline_mode = #tpu.pipeline_mode<synchronous>, transform_indices = @transform_6, window_bounds = array<i64: 1, 4>}, {pipeline_mode = #tpu.pipeline_mode<synchronous>, transform_indices = @transform_7, window_bounds = array<i64: 32, 4>}]} {
    %c0 = arith.constant 0 : index
    %c0_0 = arith.constant 0 : index
    %0 = vector.load %arg1[%c0, %c0_0] : memref<32x32xbf16, #tpu.memory_space<vmem>>, vector<32x32xbf16>
    %c0_1 = arith.constant 0 : index
    %c0_2 = arith.constant 0 : index
    %1 = vector.load %arg2[%c0_1, %c0_2] : memref<32x32xbf16, #tpu.memory_space<vmem>>, vector<32x32xbf16>
    %cst = arith.constant dense<0.000000e+00> : vector<32x32xf32>
    %2 = tpu.matmul %1, %0, %cst {dimension_numbers = #tpu.dot_dimension_numbers<[1], [0], [0], [1], [0, 0, 1, 1], [], []>} : vector<32x32xbf16>, vector<32x32xbf16>, vector<32x32xf32> -> vector<32x32xf32>
    %3 = arith.truncf %2 : vector<32x32xf32> to vector<32x32xbf16>
    %c0_3 = arith.constant 0 : index
    %c0_4 = arith.constant 0 : index
    %4 = vector.load %arg3[%c0_3, %c0_4] : memref<32x512xbf16, #tpu.memory_space<vmem>>, vector<32x512xbf16>
    %cst_5 = arith.constant dense<0.000000e+00> : vector<32x512xf32>
    %5 = tpu.matmul %3, %4, %cst_5 {dimension_numbers = #tpu.dot_dimension_numbers<[1], [0], [0], [1], [0, 0, 1, 1], [], []>} : vector<32x32xbf16>, vector<32x512xbf16>, vector<32x512xf32> -> vector<32x512xf32>
    %c0_6 = arith.constant 0 : index
    %c0_7 = arith.constant 0 : index
    %6 = vector.load %arg4[%c0_6, %c0_7] : memref<1x512xf32, #tpu.memory_space<vmem>>, vector<1x512xf32>
    %7 = vector.broadcast %6 : vector<1x512xf32> to vector<32x512xf32>
    %8 = arith.addf %5, %7 : vector<32x512xf32>
    %9 = vector.extract_strided_slice %8 {offsets = [0, 0], sizes = [32, 256], strides = [1, 1]} : vector<32x512xf32> to vector<32x256xf32>
    %cst_8 = arith.constant 0.000000e+00 : f32
    %10 = vector.broadcast %cst_8 : f32 to vector<32x256xf32>
    %11 = arith.subf %10, %9 : vector<32x256xf32>
    %12 = math.exp %11 : vector<32x256xf32>
    %cst_9 = arith.constant 1.000000e+00 : f32
    %13 = vector.broadcast %cst_9 : f32 to vector<32x256xf32>
    %14 = arith.addf %13, %12 : vector<32x256xf32>
    %15 = tpu.reciprocal %14 {approx = true} : vector<32x256xf32> -> vector<32x256xf32>
    %16 = vector.extract_strided_slice %8 {offsets = [0, 256], sizes = [32, 256], strides = [1, 1]} : vector<32x512xf32> to vector<32x256xf32>
    %17 = math.tanh %16 : vector<32x256xf32>
    %18 = arith.mulf %15, %17 : vector<32x256xf32>
    %19 = arith.truncf %18 : vector<32x256xf32> to vector<32x256xbf16>
    %c0_10 = arith.constant 0 : index
    %c0_11 = arith.constant 0 : index
    %20 = vector.load %arg5[%c0_10, %c0_11] : memref<256x32xbf16, #tpu.memory_space<vmem>>, vector<256x32xbf16>
    %cst_12 = arith.constant dense<0.000000e+00> : vector<32x32xf32>
    %21 = tpu.matmul %19, %20, %cst_12 {dimension_numbers = #tpu.dot_dimension_numbers<[1], [0], [0], [1], [0, 0, 1, 1], [], []>} : vector<32x256xbf16>, vector<256x32xbf16>, vector<32x32xf32> -> vector<32x32xf32>
    %cst_13 = arith.constant 0.000000e+00 : f32
    %22 = vector.broadcast %cst_13 : f32 to vector<32x32xf32>
    %23 = arith.maximumf %21, %22 : vector<32x32xf32>
    %24 = arith.truncf %23 : vector<32x32xf32> to vector<32x32xbf16>
    %c0_14 = arith.constant 0 : index
    %c0_15 = arith.constant 0 : index
    %25 = vector.load %arg6[%c0_14, %c0_15] : memref<32x4xbf16, #tpu.memory_space<vmem>>, vector<32x4xbf16>
    %cst_16 = arith.constant dense<0.000000e+00> : vector<32x4xf32>
    %26 = tpu.matmul %24, %25, %cst_16 {dimension_numbers = #tpu.dot_dimension_numbers<[1], [0], [0], [1], [0, 0, 1, 1], [], []>} : vector<32x32xbf16>, vector<32x4xbf16>, vector<32x4xf32> -> vector<32x4xf32>
    %c0_17 = arith.constant 0 : index
    %c0_18 = arith.constant 0 : index
    %27 = vector.load %arg7[%c0_17, %c0_18] : memref<1x4xf32, #tpu.memory_space<vmem>>, vector<1x4xf32>
    %28 = vector.broadcast %27 : vector<1x4xf32> to vector<32x4xf32>
    %29 = arith.addf %26, %28 : vector<32x4xf32>
    %c0_19 = arith.constant 0 : index
    %c0_20 = arith.constant 0 : index
    %30 = vector.load %arg8[%c0_19, %c0_20] : memref<32x4xf32, #tpu.memory_space<vmem>>, vector<32x4xf32>
    tpu.vector_store %arg8[%c0_19, %c0_20], %29 {strides = array<i32>} : memref<32x4xf32, #tpu.memory_space<vmem>>, vector<32x4xf32>,
    return
  }
  func.func @transform_0(%arg0: i32) -> (i32, i32) {
    %c0_i32 = arith.constant 0 : i32
    %c0_i32_0 = arith.constant 0 : i32
    %c0_i32_1 = arith.constant 0 : i32
    return %c0_i32, %c0_i32_0 : i32, i32
  }
  func.func @transform_1(%arg0: i32) -> (i32, i32) {
    %c0_i32 = arith.constant 0 : i32
    %c0_i32_0 = arith.constant 0 : i32
    %c0_i32_1 = arith.constant 0 : i32
    return %c0_i32, %c0_i32_0 : i32, i32
  }
  func.func @transform_2(%arg0: i32) -> (i32, i32) {
    %c0_i32 = arith.constant 0 : i32
    %c0_i32_0 = arith.constant 0 : i32
    %c0_i32_1 = arith.constant 0 : i32
    return %c0_i32, %c0_i32_0 : i32, i32
  }
  func.func @transform_3(%arg0: i32) -> (i32, i32) {
    %c0_i32 = arith.constant 0 : i32
    %c0_i32_0 = arith.constant 0 : i32
    %c0_i32_1 = arith.constant 0 : i32
    return %c0_i32, %c0_i32_0 : i32, i32
  }
  func.func @transform_4(%arg0: i32) -> (i32, i32) {
    %c0_i32 = arith.constant 0 : i32
    %c0_i32_0 = arith.constant 0 : i32
    %c0_i32_1 = arith.constant 0 : i32
    return %c0_i32, %c0_i32_0 : i32, i32
  }
  func.func @transform_5(%arg0: i32) -> (i32, i32) {
    %c0_i32 = arith.constant 0 : i32
    %c0_i32_0 = arith.constant 0 : i32
    %c0_i32_1 = arith.constant 0 : i32
    return %c0_i32, %c0_i32_0 : i32, i32
  }
  func.func @transform_6(%arg0: i32) -> (i32, i32) {
    %c0_i32 = arith.constant 0 : i32
    %c0_i32_0 = arith.constant 0 : i32
    %c0_i32_1 = arith.constant 0 : i32
    return %c0_i32, %c0_i32_0 : i32, i32
  }
  func.func @transform_7(%arg0: i32) -> (i32, i32) {
    %c0_i32 = arith.constant 0 : i32
    %c0_i32_0 = arith.constant 0 : i32
    %c0_i32_1 = arith.constant 0 : i32
    return %c0_i32, %c0_i32_0 : i32, i32
  }
}

</mosaic_0001>

<bundles_post_ra>
// kernel: tpu_custom_call.1
= control target key start
LH: loop header
LB: loop body
LE: loop exit
PB: predicated region body
PF: predicated region fallthrough
CT: control target
= control target key end

     0   :  { %vm57_vm0 = vcmask 261120   ;;  %v801_v12 = vmov 0   ;;  %v125_v35 = vlaneseq  ;;  %vm618_vm1 = vcmask 31744   ;;  %s961_s0 = inlined_call_operand.vmem [shape: bf16[32,32], index: 0, kind: input, shape index: {}]   ;;  %s962_s1 = inlined_call_operand.vmem [shape: bf16[32,32], index: 1, kind: input, shape index: {}]   ;;  %s963_s2 = inlined_call_operand.vmem [shape: bf16[32,512], index: 2, kind: input, shape index: {}]   ;;  %s964_s4 = inlined_call_operand.vmem [shape: bf16[256,32], index: 4, kind: input, shape index: {}]   ;;  %s965_s3 = inlined_call_operand.vmem [shape: f32[1,512], index: 3, kind: input, shape index: {}]   ;;  %s966_s5 = inlined_call_operand.vmem [shape: bf16[32,4], index: 5, kind: input, shape index: {}]   ;;  %s967_s6 = inlined_call_operand.vmem [shape: f32[1,4], index: 6, kind: input, shape index: {}]   ;;  %s968_s7 = inlined_call_operand.vmem [shape: f32[32,4], index: 7, kind: output, shape index: {}]  }
   0x1   :  { %v719_v0 = vld [vmem:[%s961_s0 + $0x8] sm:$0xff]   ;;  %v720_v1 = vld [vmem:[%s961_s0] sm:$0xff]   ;;  %223 = vmatprep.mubr.bf16.mxu1 %v801_v12  ;;  %v735_v19 = vld [vmem:[%s964_s4 + $0x78] sm:$0xff]  }
   0x2   :  { %702 = vmatprep.subr.bf16.mxu0 %v719_v0  ;;  %v721_v2 = vld [vmem:[%s962_s1] sm:$0xff]   ;;  %v722_v3 = vld [vmem:[%s962_s1 + $0x8] sm:$0xff]   ;;  %v736_v20 = vld [vmem:[%s964_s4 + $0x38] sm:$0xff]   ;;  %v126_v36 = vshrl.u32 %v125_v35, 7 }
   0x3   :  { %703 = vmatpush3.bf16.msra.mxu0 %v719_v0  ;;  %706 = vmatprep.mubr.msk.bf16.mxu0 %vm57_vm0, %v721_v2  ;;  %v723_v4 = vld [vmem:[%s963_s2 + $0x24] ss:$16 sps:$4 sm:$0xff]   ;;  %v725_v5 = vld [vmem:[%s963_s2 + $0x28] ss:$16 sps:$4 sm:$0xff]   ;;  %v727_v6 = vld [vmem:[%s963_s2 + $0x2c] ss:$16 sps:$4 sm:$0xff]  }
   0x4   :  { %704 = vmatprep.subr.bf16.mxu0 %v720_v1  ;;  %203 = vmatprep.subr.bf16.mxu1 %v723_v4  ;;  %v728_v7 = vld [vmem:[%s963_s2 + $0x20] ss:$16 sps:$4 sm:$0xff]   ;;  %v729_v8 = vld [vmem:[%s963_s2 + $0x4] ss:$16 sps:$4 sm:$0xff]   ;;  %v733_v9 = vld [vmem:[%s963_s2 + $0xc] ss:$16 sps:$4 sm:$0xff]  }
   0x5   :  { %204 = vmatpush1.bf16.msra.mxu1 %v728_v7  ;;  %v731_v10 = vld [vmem:[%s963_s2 + $0x8] ss:$16 sps:$4 sm:$0xff]   ;;  %v734_v11 = vld [vmem:[%s963_s2] ss:$16 sps:$4 sm:$0xff]   ;;  %v127_v37 = vsub.s32 0, %v126_v36  ;;  %v131_v39 = vsub.s32 1, %v126_v36 }
   0x6   :  { %205 = vmatprep.subr.bf16.mxu1 %v729_v8  ;;  %v737_v21 = vld [vmem:[%s964_s4 + $0x70] sm:$0xff]   ;;  %v739_v23 = vld [vmem:[%s964_s4 + $0x68] sm:$0xff]   ;;  %v741_v25 = vld [vmem:[%s964_s4 + $0x60] sm:$0xff]   ;;  %v139_v62 = vsub.s32 3, %v126_v36  ;;  %v135_v8 = vsub.s32 2, %v126_v36 }
   0x7   :  { %705 = vmatpush3.bf16.msra.mxu0 %v720_v1  ;;  %v738_v22 = vld [vmem:[%s964_s4 + $0x30] sm:$0xff]   ;;  %v740_v24 = vld [vmem:[%s964_s4 + $0x28] sm:$0xff]   ;;  %v742_v26 = vld [vmem:[%s964_s4 + $0x20] sm:$0xff]  }
   0x8   :  { %256 = vmatprep.subr.bf16.mxu0 %v727_v6  ;;  %v743_v27 = vld [vmem:[%s964_s4 + $0x58] sm:$0xff]   ;;  %v745_v29 = vld [vmem:[%s964_s4 + $0x50] sm:$0xff]   ;;  %v747_v31 = vld [vmem:[%s964_s4 + $0x48] sm:$0xff]  }
   0x9   :  { %206 = vmatpush1.bf16.msra.mxu1 %v734_v11  ;;  %v744_v28 = vld [vmem:[%s964_s4 + $0x18] sm:$0xff]   ;;  %v746_v30 = vld [vmem:[%s964_s4 + $0x10] sm:$0xff]   ;;  %v748_v32 = vld [vmem:[%s964_s4 + $0x8] sm:$0xff]  }
   0xa   :  { %707 = vmatmul.mubr.msk.bf16.vlgmr.msra.gmra.mxu0 %vm57_vm0, %v722_v3  ;;  %670 = vmatprep.subr.bf16.mxu1 %v735_v19  ;;  %v749_v33 = vld [vmem:[%s964_s4 + $0x40] sm:$0xff]  }
   0xb   :  { %257 = vmatpush1.bf16.msra.mxu0 %v725_v5  ;;  %276 = vmatprep.mubr.bf16.mxu0 %v801_v12  ;;  %v750_v34 = vld [vmem:[%s964_s4] sm:$0xff]  }
   0xc   :  { %258 = vmatprep.subr.bf16.mxu0 %v733_v9  ;;  %v123_v38 = vld [vmem:[%s965_s3] sm:$0xf] }
   0xd   :  { %v128_v40 = vrot.slane %v123_v38, %v127_v37  ;;  %v132_v41 = vrot.slane %v123_v38, %v131_v39  ;;  %v140_v11 = vrot.slane %v123_v38, %v139_v62 }
   0xf   :  { %259 = vmatpush1.bf16.msra.mxu0 %v731_v10 }
  0xca   :  { %v708_v13 = vpop.f32.mrf.mxu0 }
  0xcc   :  { %v98_v14 = vpop.f32.mrf.mxu0 }
  0xce   :  { %v709_v15 = vpop.f32.mrf.mxu0 }
  0xcf   :  { %v114_v18 = vpack.c.bf16 %v709_v15, %v708_v13 }
  0xd0   :  { %v101_v16 = vpop.f32.mrf.mxu0 }
  0xd1   :  { %v113_v17 = vpack.c.bf16 %v101_v16, %v98_v14 }
  0xd3   :  { %641 = vmatmul.mubr.msk.bf16.vlgmr.msra.gmra.mxu1 %vm57_vm0, %v113_v17  ;;  %643 = vmatmul.mubr.msk.bf16.vlgmr.msra.gmra.mxu0 %vm57_vm0, %v113_v17  ;;  %v136_v17 = vrot.slane %v123_v38, %v135_v8 }
  0xd4   :  { %233 = vmatprep.mubr.bf16.mxu1 %v801_v12  ;;  %286 = vmatprep.mubr.bf16.mxu0 %v801_v12 }
  0xd5   :  { %671 = vmatpush3.bf16.msra.mxu1 %v736_v20 }
  0xd6   :  { %672 = vmatprep.subr.bf16.mxu1 %v737_v21 }
  0xd9   :  { %673 = vmatpush3.bf16.msra.mxu1 %v738_v22 }
  0xda   :  { %674 = vmatprep.subr.bf16.mxu1 %v739_v23 }
  0xdb   :  { %642 = vmatmul.mubr.msk.bf16.gmra.mxu1 %vm57_vm0, %v114_v18  ;;  %644 = vmatmul.mubr.msk.bf16.gmra.mxu0 %vm57_vm0, %v114_v18 }
  0xdd   :  { %675 = vmatpush3.bf16.msra.mxu1 %v740_v24 }
  0xde   :  { %676 = vmatprep.subr.bf16.mxu1 %v741_v25 }
  0xe1   :  { %677 = vmatpush3.bf16.msra.mxu1 %v742_v26 }
  0xe2   :  { %678 = vmatprep.subr.bf16.mxu1 %v743_v27 }
  0xe5   :  { %679 = vmatpush3.bf16.msra.mxu1 %v744_v28 }
  0xe6   :  { %680 = vmatprep.subr.bf16.mxu1 %v745_v29 }
  0xe9   :  { %681 = vmatpush3.bf16.msra.mxu1 %v746_v30 }
  0xea   :  { %682 = vmatprep.subr.bf16.mxu1 %v747_v31 }
  0xed   :  { %683 = vmatpush3.bf16.msra.mxu1 %v748_v32 }
  0xee   :  { %684 = vmatprep.subr.bf16.mxu1 %v749_v33 }
  0xf1   :  { %685 = vmatpush3.bf16.msra.mxu1 %v750_v34 }
 0x193   :  { %v225_v42 = vpop.f32.mrf.mxu1  ;;  %v935_v43 = vpop.f32.mrf.mxu0 }
 0x194   :  { %v226_v44 = vadd.f32 %v225_v42, %v128_v40  ;;  %v279_v31 = vadd.f32 %v935_v43, %v136_v17 }
 0x195   :  { %v227_v45 = vpop.f32.mrf.mxu1  ;;  %v280_v46 = vpop.f32.mrf.mxu0 }
 0x196   :  { %v297_v47 = vsub.f32 0.0, %v226_v44  ;;  %v228_v48 = vadd.f32 %v227_v45, %v132_v41  ;;  %v281_v19 = vadd.f32 %v280_v46, %v140_v11 }
 0x197   :  { %v229_v49 = vpop.f32.mrf.mxu1  ;;  %v282_v53 = vpop.f32.mrf.mxu0 }
 0x198   :  { %v305_v50 = vmul.f32 1.442695, %v297_v47  ;;  %v298_v51 = vsub.f32 0.0, %v228_v48  ;;  %v230_v52 = vadd.f32 %v229_v49, %v128_v40  ;;  %v283_v21 = vadd.f32 %v282_v53, %v136_v17 }
 0x199   :  { %v231_v54 = vpop.f32.mrf.mxu1  ;;  %v284_v63 = vpop.f32.mrf.mxu0 }
 0x19a   :  { %v307_v55 = vmul.f32 1.442695, %v298_v51  ;;  %v299_v56 = vsub.f32 0.0, %v230_v52  ;;  %v232_v57 = vadd.f32 %v231_v54, %v132_v41  ;;  %753 = vpow2.f32 %v305_v50 }
 0x19b   :  { %v235_v58 = vpop.f32.mrf.mxu1  ;;  %v288_v9 = vpop.f32.mrf.mxu0  ;;  %v285_v23 = vadd.f32 %v284_v63, %v140_v11 }
 0x19c   :  { %755 = vpow2.f32 %v307_v55  ;;  %v309_v59 = vmul.f32 1.442695, %v299_v56  ;;  %v300_v60 = vsub.f32 0.0, %v232_v57  ;;  %v236_v61 = vadd.f32 %v235_v58, %v128_v40 }
 0x19d   :  { %v237_v0 = vpop.f32.mrf.mxu1  ;;  %v290_v18 = vpop.f32.mrf.mxu0  ;;  %v289_v44 = vadd.f32 %v288_v9, %v136_v17 }
 0x19e   :  { %757 = vpow2.f32 %v309_v59  ;;  %v311_v1 = vmul.f32 1.442695, %v300_v60  ;;  %v301_v2 = vsub.f32 0.0, %v236_v61  ;;  %v238_v3 = vadd.f32 %v237_v0, %v132_v41 }
 0x19f   :  { %v239_v4 = vpop.f32.mrf.mxu1  ;;  %v292_v25 = vpop.f32.mrf.mxu0  ;;  %v291_v34 = vadd.f32 %v290_v18, %v140_v11 }
 0x1a0   :  { %759 = vpow2.f32 %v311_v1  ;;  %v313_v5 = vmul.f32 1.442695, %v301_v2  ;;  %v302_v6 = vsub.f32 0.0, %v238_v3  ;;  %v240_v7 = vadd.f32 %v239_v4, %v128_v40 }
 0x1a1   :  { %v241_v10 = vpop.f32.mrf.mxu1  ;;  %v294_v32 = vpop.f32.mrf.mxu0  ;;  %v293_v35 = vadd.f32 %v292_v25, %v136_v17 }
 0x1a2   :  { %v315_v12 = vmul.f32 1.442695, %v302_v6  ;;  %v303_v13 = vsub.f32 0.0, %v240_v7  ;;  %v242_v14 = vadd.f32 %v241_v10, %v132_v41  ;;  %761 = vpow2.f32 %v313_v5  ;;  %v751_v10 = vld [vmem:[%s966_s5 + $0x8] sm:$0xff]  }
 0x1a3   :  { %v295_v37 = vadd.f32 %v294_v32, %v140_v11  ;;  %710 = vmatprep.subr.bf16.mxu0 %v751_v10  ;;  %v752_v11 = vld [vmem:[%s966_s5] sm:$0xff]  }
 0x1a4   :  { %763 = vpow2.f32 %v315_v12  ;;  %v317_v15 = vmul.f32 1.442695, %v303_v13  ;;  %v304_v16 = vsub.f32 0.0, %v242_v14  ;;  %711 = vmatpush3.bf16.msra.mxu0 %v751_v10 }
 0x1a5   :  { %712 = vmatprep.subr.bf16.mxu0 %v752_v11 }
 0x1a6   :  { %765 = vpow2.f32 %v317_v15  ;;  %v319_v20 = vmul.f32 1.442695, %v304_v16 }
 0x1a7   :  { %v754_v22 = vpop.eup %753 }
 0x1a8   :  { %767 = vpow2.f32 %v319_v20  ;;  %v321_v28 = vadd.f32 1.0, %v754_v22  ;;  %713 = vmatpush3.bf16.msra.mxu0 %v752_v11 }
 0x1a9   :  { %v756_v24 = vpop.eup %755  ;;  %769 = vtanh.f32 %v281_v19 }
 0x1aa   :  { %v322_v26 = vadd.f32 1.0, %v756_v24  ;;  %771 = vtanh.f32 %v283_v21 }
 0x1ab   :  { %v758_v27 = vpop.eup %757  ;;  %773 = vtanh.f32 %v285_v23 }
 0x1ac   :  { %v323_v29 = vadd.f32 1.0, %v758_v27  ;;  %775 = vrcp.f32 %v322_v26 }
 0x1ad   :  { %v760_v30 = vpop.eup %759 }
 0x1ae   :  { %777 = vrcp.f32 %v323_v29  ;;  %v324_v33 = vadd.f32 1.0, %v760_v30  ;;  %v661_v30 = vld [vmem:[%s967_s6] ss:$0 sm:$0xff] }
 0x1af   :  { %779 = vrcp.f32 %v321_v28  ;;  %v762_v36 = vpop.eup %761 }
 0x1b0   :  { %781 = vrcp.f32 %v324_v33  ;;  %v325_v41 = vadd.f32 1.0, %v762_v36 }
 0x1b1   :  { %v764_v38 = vpop.eup %763  ;;  %783 = vtanh.f32 %v279_v31 }
 0x1b2   :  { %v326_v39 = vadd.f32 1.0, %v764_v38  ;;  %785 = vtanh.f32 %v291_v34 }
 0x1b3   :  { %v766_v40 = vpop.eup %765  ;;  %787 = vtanh.f32 %v293_v35 }
 0x1b4   :  { %v327_v42 = vadd.f32 1.0, %v766_v40  ;;  %789 = vtanh.f32 %v295_v37 }
 0x1b5   :  { %v768_v43 = vpop.eup %767  ;;  %791 = vrcp.f32 %v326_v39 }
 0x1b6   :  { %793 = vrcp.f32 %v327_v42  ;;  %v328_v45 = vadd.f32 1.0, %v768_v43  ;;  %v770_v46 = vpop.eup %769 }
 0x1b7   :  { %795 = vrcp.f32 %v325_v41  ;;  %v772_v47 = vpop.eup %771 }
 0x1b8   :  { %797 = vrcp.f32 %v328_v45  ;;  %v774_v48 = vpop.eup %773 }
 0x1b9   :  { %799 = vtanh.f32 %v289_v44  ;;  %v776_v49 = vpop.eup %775 }
 0x1ba   :  { %v346_v55 = vmul.f32 %v776_v49, %v770_v46 }
 0x1bb   :  { %v778_v50 = vpop.eup %777 }
 0x1bc   :  { %v780_v51 = vpop.eup %779  ;;  %v347_v53 = vmul.f32 %v778_v50, %v772_v47 }
 0x1bd   :  { %v782_v52 = vpop.eup %781 }
 0x1be   :  { %v784_v54 = vpop.eup %783  ;;  %v348_v56 = vmul.f32 %v782_v52, %v774_v48 }
 0x1bf   :  { %v786_v57 = vpop.eup %785  ;;  %v345_v58 = vmul.f32 %v784_v54, %v780_v51 }
 0x1c0   :  { %v788_v59 = vpop.eup %787  ;;  %v354_v60 = vpack.c.bf16 %v348_v56, %v346_v55 }
 0x1c1   :  { %v790_v61 = vpop.eup %789  ;;  %v353_v62 = vpack.c.bf16 %v347_v53, %v345_v58 }
 0x1c2   :  { %v792_v63 = vpop.eup %791  ;;  %517 = vmatprep.mubr.bf16.mxu1 %v354_v60 }
 0x1c3   :  { %v794_v0 = vpop.eup %793  ;;  %518 = vmatmul.mubr.bf16.vlgmr.msra.gmra.mxu1 %v353_v62  ;;  %v350_v5 = vmul.f32 %v792_v63, %v786_v57 }
 0x1c4   :  { %v796_v1 = vpop.eup %795  ;;  %v351_v3 = vmul.f32 %v794_v0, %v788_v59 }
 0x1c5   :  { %v798_v2 = vpop.eup %797 }
 0x1c6   :  { %v800_v4 = vpop.eup %799  ;;  %v352_v6 = vmul.f32 %v798_v2, %v790_v61 }
 0x1c7   :  { %v349_v7 = vmul.f32 %v800_v4, %v796_v1 }
 0x1c8   :  { %v356_v8 = vpack.c.bf16 %v352_v6, %v350_v5 }
 0x1c9   :  { %v355_v9 = vpack.c.bf16 %v351_v3, %v349_v7 }
 0x1ca   :  { %525 = vmatprep.mubr.bf16.mxu1 %v356_v8 }
 0x1cb   :  { %526 = vmatmul.mubr.bf16.gmra.mxu1 %v355_v9 }
 0x283   :  { %v686_v12 = vpop.f32.mrf.mxu1 }
 0x285   :  { %v687_v13 = vpop.f32.mrf.mxu1 }
 0x286   :  { %v688_v15 = vadd.f32 %v687_v13, %v686_v12 }
 0x287   :  { %v689_v14 = vpop.f32.mrf.mxu1 }
 0x288   :  { %v534_v19 = vmax.f32 %v688_v15, 0.0 }
 0x289   :  { %v690_v16 = vpop.f32.mrf.mxu1 }
 0x28a   :  { %v691_v17 = vadd.f32 %v690_v16, %v689_v14 }
 0x28b   :  { %v692_v18 = vpop.f32.mrf.mxu1 }
 0x28c   :  { %v535_v20 = vmax.f32 %v691_v17, 0.0 }
 0x28d   :  { %v693_v21 = vpop.f32.mrf.mxu1 }
 0x28e   :  { %v538_v22 = vpack.c.bf16 %v535_v20, %v534_v19  ;;  %v694_v24 = vadd.f32 %v693_v21, %v692_v18 }
 0x28f   :  { %v695_v23 = vpop.f32.mrf.mxu1 }
 0x290   :  { %714 = vmatprep.mubr.msk.bf16.mxu0 %vm57_vm0, %v538_v22  ;;  %v536_v27 = vmax.f32 %v694_v24, 0.0 }
 0x291   :  { %v696_v25 = vpop.f32.mrf.mxu1 }
 0x292   :  { %v697_v26 = vadd.f32 %v696_v25, %v695_v23 }
 0x294   :  { %v537_v28 = vmax.f32 %v697_v26, 0.0 }
 0x296   :  { %v539_v29 = vpack.c.bf16 %v537_v28, %v536_v27 }
 0x298   :  { %715 = vmatmul.mubr.msk.bf16.vlgmr.msra.gmra.mxu0 %vm57_vm0, %v539_v29 }
 0x358   :  { %v716_v31 = vpop.f32.mrf.mxu0 }
 0x359   :  { %v612_v32 = vadd.f32 %v716_v31, %v661_v30 }
 0x35a   :  { %v603_v33 = vpop.f32.mrf.mxu0 }
 0x35b   :  { %621 = vst.msk [vmem:[%s968_s7 + $0x10] sm:$0xff] %vm618_vm1, %v612_v32  ;;  %v604_v34 = vadd.f32 %v661_v30, %v603_v33 }
 0x35c   :  { %v717_v35 = vpop.f32.mrf.mxu0 }
 0x35d   :  { %619 = vst.msk [vmem:[%s968_s7] sm:$0xff] %vm618_vm1, %v604_v34  ;;  %v615_v36 = vadd.f32 %v717_v35, %v661_v30 }
 0x35e   :  { %v606_v37 = vpop.f32.mrf.mxu0 }
 0x35f   :  { %622 = vst.msk [vmem:[%s968_s7 + $0x18] sm:$0xff] %vm618_vm1, %v615_v36  ;;  %v607_v38 = vadd.f32 %v661_v30, %v606_v37 }
 0x361   :  { %620 = vst.msk [vmem:[%s968_s7 + $0x8] sm:$0xff] %vm618_vm1, %v607_v38 }

</bundles_post_ra>
